<compile_context>
chip_gen: v6e
topology: v6e:2x2x1
jax: 0.10.0
libtpu: 0.0.40
codegen_flags: <defaults>
</compile_context>

<pallas_src>
import jax
import jax.numpy as jnp
from jax.experimental import pallas as pl
from jax.experimental.pallas import tpu as pltpu

INPUT_DIM = 5
HIDDEN_DIM = 64
NUM_ACTIONS = 50

HID_PAD = 128            # fc1 output / fc2 contraction padded to full lane width
DEFAULT_BLOCK_B = 4096   # batch tile for the gridded (large-B) path


def _round_up(n, m):
    return ((n + m - 1) // m) * m


def _cdiv(a, b):
    return -(-a // b)


def mlp_kernel(x_ref, w1_ref, b1_ref, w2_ref, b2_ref, out_ref):
    # Fused: x @ W1 + b1 -> ReLU -> @ W2 + b2, all in VMEM.
    # Explicit casts to the weight dtype keep the bf16 MXU path; accumulation
    # stays f32 via preferred_element_type.
    x = x_ref[...].astype(w1_ref.dtype)                        # (TB, 5)
    h = jnp.dot(x, w1_ref[...], preferred_element_type=jnp.float32)
    h = jnp.maximum(h + b1_ref[...], 0.0)                      # (TB, 128) f32
    y = jnp.dot(h.astype(w2_ref.dtype), w2_ref[...],
                preferred_element_type=jnp.float32)            # (TB, 50) f32
    out_ref[...] = (y + b2_ref[...]).astype(out_ref.dtype)


def price_predict_forward(x, params, *, block_b=DEFAULT_BLOCK_B):
    """x: (B, input_dim) float32 -> (B, num_actions) float32."""
    w1, b1, w2, b2 = params["w1"], params["b1"], params["w2"], params["b2"]
    input_dim = w1.shape[0]
    num_actions = w2.shape[1]
    assert x.shape[1] == input_dim

    B = x.shape[0]
    out_shape = jax.ShapeDtypeStruct((B, num_actions), jnp.float32)

    if B <= block_b:
        # -------- small/medium batch: single full-array block, no grid -----
        return pl.pallas_call(
            mlp_kernel,
            out_shape=out_shape,
        )(x, w1, b1, w2, b2)

    # -------- large batch: grid over the batch axis ------------------------
    # Clamp the tile so the grid has >= 2 steps (v7x: both TensorCores engage
    # with dimension_semantics=("parallel",)); keep it a multiple of 8.
    tb = min(block_b, _round_up(_cdiv(B, 2), 512))
    tb = _round_up(max(tb, 8), 8)
    grid = (pl.cdiv(B, tb),)   # last block may be ragged; Pallas masks it

    compiler_params = pltpu.CompilerParams(
        dimension_semantics=("parallel",),
        # Big tiles need more scoped VMEM than v5e's 16 MiB default.
        vmem_limit_bytes=(48 * 1024 * 1024 if tb >= 2048 else None),
    )

    return pl.pallas_call(
        mlp_kernel,
        out_shape=out_shape,
        grid=grid,
        in_specs=[
            pl.BlockSpec((tb, input_dim), lambda i: (i, 0)),
            # Weights / biases: constant index_map -> DMA'd once, VMEM-resident.
            pl.BlockSpec(w1.shape, lambda i: (0, 0)),
            pl.BlockSpec(b1.shape, lambda i: (0, 0)),
            pl.BlockSpec(w2.shape, lambda i: (0, 0)),
            pl.BlockSpec(b2.shape, lambda i: (0, 0)),
        ],
        out_specs=pl.BlockSpec((tb, num_actions), lambda i: (i, 0)),
        compiler_params=compiler_params,
    )(x, w1, b1, w2, b2)


def init_params(key, input_dim=INPUT_DIM, num_actions=NUM_ACTIONS,
                hidden_dim=HIDDEN_DIM, dtype=jnp.bfloat16):
    # PyTorch nn.Linear default init: U(-1/sqrt(fan_in), 1/sqrt(fan_in)).
    # Weights stored pre-transposed as (in, out).  Only the *hidden* dim is
    # padded (64 -> 128, zeros -> math unchanged); input (5) and output (50)
    # stay at their true widths so x needs no wrapper-side padding and the
    # output needs no slicing.
    k1, k2, k3, k4 = jax.random.split(key, 4)
    bound1 = 1.0 / jnp.sqrt(input_dim)
    bound2 = 1.0 / jnp.sqrt(hidden_dim)

    w1 = jax.random.uniform(k1, (input_dim, hidden_dim), jnp.float32,
                            -bound1, bound1)
    b1 = jax.random.uniform(k2, (hidden_dim,), jnp.float32, -bound1, bound1)
    w2 = jax.random.uniform(k3, (hidden_dim, num_actions), jnp.float32,
                            -bound2, bound2)
    b2 = jax.random.uniform(k4, (num_actions,), jnp.float32, -bound2, bound2)

    hid_pad = _round_up(max(hidden_dim, 1), HID_PAD)

    w1_pad = jnp.zeros((input_dim, hid_pad), dtype).at[:, :hidden_dim].set(
        w1.astype(dtype))
    b1_pad = jnp.zeros((1, hid_pad), jnp.float32).at[0, :hidden_dim].set(b1)
    w2_pad = jnp.zeros((hid_pad, num_actions), dtype).at[:hidden_dim, :].set(
        w2.astype(dtype))
    b2_pad = b2.reshape(1, num_actions)

    return {
        "w1": w1_pad, "b1": b1_pad, "w2": w2_pad, "b2": b2_pad,
        "input_dim": input_dim, "hidden_dim": hidden_dim,
        "num_actions": num_actions,
    }


def reference_forward(x, params):
    # Pure-JAX reference that mirrors the kernel math (including the storage-
    # dtype rounding of weights/activations); padded hidden columns are zero,
    # so they contribute nothing.
    w1 = params["w1"].astype(jnp.float32)
    b1 = params["b1"]
    w2 = params["w2"].astype(jnp.float32)
    b2 = params["b2"]
    xb = x.astype(params["w1"].dtype).astype(jnp.float32)
    h = jnp.maximum(xb @ w1 + b1, 0.0)
    hb = h.astype(params["w2"].dtype).astype(jnp.float32)
    return hb @ w2 + b2


if __name__ == "__main__":
    key = jax.random.PRNGKey(0)
    pkey, xkey_small, xkey_large = jax.random.split(key, 3)

    params = init_params(pkey)

    # --- small batch: grid-less single-block path --------------------------
    batch_small = 8
    x_small = jax.random.normal(xkey_small, (batch_small, INPUT_DIM),
                                jnp.float32)
    out_small = jax.block_until_ready(price_predict_forward(x_small, params))
    ref_small = reference_forward(x_small, params)
    assert out_small.shape == (batch_small, NUM_ACTIONS)
    assert jnp.allclose(out_small, ref_small, atol=1e-4, rtol=1e-4)

    # --- gridded, batch-parallel path (>=2 steps, ragged last block) -------
    # block_b is tiny here only to exercise the gridded path at test scale;
    # real workloads use DEFAULT_BLOCK_B (4096).
    batch_large = 300
    x_large = jax.random.normal(xkey_large, (batch_large, INPUT_DIM),
                                jnp.float32)
    out_large = jax.block_until_ready(
        price_predict_forward(x_large, params, block_b=256))
    ref_large = reference_forward(x_large, params)
    assert out_large.shape == (batch_large, NUM_ACTIONS)
    assert jnp.allclose(out_large, ref_large, atol=1e-4, rtol=1e-4)

    print("KERNEL_OK")
</pallas_src>

<mosaic_0001>
module attributes {stable_mosaic.version = 11 : i64} {
  func.func @mlp_kernel(%arg0: memref<8x5xf32, #tpu.memory_space<vmem>>, %arg1: memref<5x128xbf16, #tpu.memory_space<vmem>>, %arg2: memref<1x128xf32, #tpu.memory_space<vmem>>, %arg3: memref<128x50xbf16, #tpu.memory_space<vmem>>, %arg4: memref<1x50xf32, #tpu.memory_space<vmem>>, %arg5: memref<8x50xf32, #tpu.memory_space<vmem>>) attributes {dimension_semantics = [], scalar_prefetch = 0 : i64, scratch_operands = 0 : i64, tpu.core_type = #tpu.core_type<tc>} {
    %c0 = arith.constant 0 : index
    %c0_0 = arith.constant 0 : index
    %0 = vector.load %arg0[%c0, %c0_0] : memref<8x5xf32, #tpu.memory_space<vmem>>, vector<8x5xf32>
    %1 = arith.truncf %0 : vector<8x5xf32> to vector<8x5xbf16>
    %c0_1 = arith.constant 0 : index
    %c0_2 = arith.constant 0 : index
    %2 = vector.load %arg1[%c0_1, %c0_2] : memref<5x128xbf16, #tpu.memory_space<vmem>>, vector<5x128xbf16>
    %cst = arith.constant dense<0.000000e+00> : vector<8x128xf32>
    %3 = tpu.matmul %1, %2, %cst {dimension_numbers = #tpu.dot_dimension_numbers<[1], [0], [0], [1], [0, 0, 1, 1], [], []>} : vector<8x5xbf16>, vector<5x128xbf16>, vector<8x128xf32> -> vector<8x128xf32>
    %c0_3 = arith.constant 0 : index
    %c0_4 = arith.constant 0 : index
    %4 = vector.load %arg2[%c0_3, %c0_4] : memref<1x128xf32, #tpu.memory_space<vmem>>, vector<1x128xf32>
    %5 = vector.broadcast %4 : vector<1x128xf32> to vector<8x128xf32>
    %6 = arith.addf %3, %5 : vector<8x128xf32>
    %cst_5 = arith.constant 0.000000e+00 : f32
    %7 = vector.broadcast %cst_5 : f32 to vector<8x128xf32>
    %8 = arith.maximumf %6, %7 : vector<8x128xf32>
    %9 = arith.truncf %8 : vector<8x128xf32> to vector<8x128xbf16>
    %c0_6 = arith.constant 0 : index
    %c0_7 = arith.constant 0 : index
    %10 = vector.load %arg3[%c0_6, %c0_7] : memref<128x50xbf16, #tpu.memory_space<vmem>>, vector<128x50xbf16>
    %cst_8 = arith.constant dense<0.000000e+00> : vector<8x50xf32>
    %11 = tpu.matmul %9, %10, %cst_8 {dimension_numbers = #tpu.dot_dimension_numbers<[1], [0], [0], [1], [0, 0, 1, 1], [], []>} : vector<8x128xbf16>, vector<128x50xbf16>, vector<8x50xf32> -> vector<8x50xf32>
    %c0_9 = arith.constant 0 : index
    %c0_10 = arith.constant 0 : index
    %12 = vector.load %arg4[%c0_9, %c0_10] : memref<1x50xf32, #tpu.memory_space<vmem>>, vector<1x50xf32>
    %13 = vector.broadcast %12 : vector<1x50xf32> to vector<8x50xf32>
    %14 = arith.addf %11, %13 : vector<8x50xf32>
    %c0_11 = arith.constant 0 : index
    %c0_12 = arith.constant 0 : index
    %15 = vector.load %arg5[%c0_11, %c0_12] : memref<8x50xf32, #tpu.memory_space<vmem>>, vector<8x50xf32>
    tpu.vector_store %arg5[%c0_11, %c0_12], %14 {strides = array<i32>} : memref<8x50xf32, #tpu.memory_space<vmem>>, vector<8x50xf32>,
    return
  }
}

</mosaic_0001>

<bundles_post_ra>
// kernel: tpu_custom_call.1
= control target key start
LH: loop header
LB: loop body
LE: loop exit
PB: predicated region body
PF: predicated region fallthrough
CT: control target
= control target key end

     0   :  { %vm36_vm0 = vcmask 1041408   ;;  %vm37_vm1 = vcmask 1042432   ;;  %v294_v1 = vmov 0.0   ;;  %v295_v2 = vmov 65535   ;;  %s367_s0 = inlined_call_operand.vmem [shape: f32[8,5], index: 0, kind: input, shape index: {}]   ;;  %s368_s1 = inlined_call_operand.vmem [shape: bf16[5,128], index: 1, kind: input, shape index: {}]   ;;  %s369_s2 = inlined_call_operand.vmem [shape: f32[1,128], index: 2, kind: input, shape index: {}]   ;;  %s370_s3 = inlined_call_operand.vmem [shape: bf16[128,50], index: 3, kind: input, shape index: {}]   ;;  %s371_s4 = inlined_call_operand.vmem [shape: f32[1,50], index: 4, kind: input, shape index: {}]   ;;  %s372_s5 = inlined_call_operand.hbm [shape: f32[8,50], index: 5, kind: output, shape index: {}]  }
   0x1   :  { %v24_v0 = vld [vmem:[%s368_s1] sm:$0x7]  ;;  %234 = vmatprep.subr.bf16.mxu0 %v294_v1  ;;  %v38_v3 = vsel %vm36_vm0, 4294967295, %v295_v2  ;;  %240 = vmatprep.subr.bf16.mxu1 %v294_v1  ;;  %vm296_vm2 = vmmov 0   ;;  %v264_v6 = vld [vmem:[%s370_s3 + $0x38] sm:$0xff]   ;;  %v265_v9 = vld [vmem:[%s370_s3 + $0x30] sm:$0xff]  }
   0x2   :  { %v22_v4 = vld [vmem:[%s367_s0] sm:$0xff]  ;;  %v39_v5 = vsel %vm37_vm1, %v38_v3, 0  ;;  %236 = vmatprep.mubr.msk.bf16.mxu0 %vm296_vm2, %v294_v1  ;;  %256 = vmatprep.mubr.msk.bf16.mxu1 %vm296_vm2, %v294_v1  ;;  %vm32_vm3 = vcmask 39936   ;;  %v266_v10 = vld [vmem:[%s370_s3 + $0x28] sm:$0xff]  }
   0x3   :  { %v41_v7 = vand.u32 %v39_v5, %v24_v0  ;;  %v23_v8 = vpack.c.bf16 %v22_v4, %v22_v4  ;;  %241 = vmatpush3.bf16.msra.mxu1 %v264_v6 }
   0x4   :  { %242 = vmatprep.subr.bf16.mxu1 %v294_v1 }
   0x5   :  { %235 = vmatpush3.bf16.msra.mxu0 %v41_v7 }
   0x7   :  { %243 = vmatpush3.bf16.msra.mxu1 %v265_v9 }
   0x8   :  { %237 = vmatmul.mubr.msk.bf16.vlgmr.msra.gmra.mxu0 %vm32_vm3, %v23_v8  ;;  %244 = vmatprep.subr.bf16.mxu1 %v294_v1 }
   0x9   :  { %10 = vsyncpa [#allocation3], 0  ;;  %v267_v11 = vld [vmem:[%s370_s3 + $0x20] sm:$0xff]   ;;  %v268_v12 = vld [vmem:[%s370_s3 + $0x18] sm:$0xff]   ;;  %s297_s15 = smov [#allocation2]   ;;  %vm196_vm4 = vcmask 408576  }
   0xa   :  { %v269_v13 = vld [vmem:[%s370_s3 + $0x10] sm:$0xff]   ;;  %v270_v14 = vld [vmem:[%s370_s3 + $0x8] sm:$0xff]   ;;  %v271_v15 = vld [vmem:[%s370_s3] sm:$0xff]   ;;  %s204_s16 = sshll.u32 %s297_s15, 4  ;;  %s205_s16 = int_to_ptr.vmem [resolvable:$true] %s204_s16 }
   0xb   :  { %245 = vmatpush3.bf16.msra.mxu1 %v266_v10  ;;  %v212_v16 = vld [vmem:[%s369_s2] ss:$0 sm:$0xff]  ;;  %s272_s2 = scalar_lea.vmem %s205_s16, 128  ;;  %p277_p1 = scmp.lt.s32.totalorder %s205_s16, %s205_s16 }
   0xc   :  { %246 = vmatprep.subr.bf16.mxu1 %v294_v1  ;;  %v214_v24 = vld [vmem:[%s371_s4] ss:$0 sm:$0xff]  ;;  %p273_p0 = scmp.ne.s32.totalorder %s205_s16, %s272_s2  ;;  %p278_p2 = scmp.lt.s32.totalorder %s272_s2, %s272_s2 }
   0xe   :  { %p279_p3 = por %p278_p2, %p277_p1 }
   0xf   :  { %247 = vmatpush3.bf16.msra.mxu1 %v267_v11 }
  0x10   :  { %248 = vmatprep.subr.bf16.mxu1 %v294_v1  ;;  %p280_p4 = pnand %p279_p3, %p273_p0 }
  0x13   :  { %249 = vmatpush3.bf16.msra.mxu1 %v268_v12 }
  0x14   :  { %250 = vmatprep.subr.bf16.mxu1 %v294_v1 }
  0x17   :  { %251 = vmatpush3.bf16.msra.mxu1 %v269_v13 }
  0x18   :  { %252 = vmatprep.subr.bf16.mxu1 %v294_v1 }
  0x1b   :  { %253 = vmatpush3.bf16.msra.mxu1 %v270_v14 }
  0x1c   :  { %254 = vmatprep.subr.bf16.mxu1 %v294_v1 }
  0x1f   :  { %255 = vmatpush3.bf16.msra.mxu1 %v271_v15 }
  0xc8   :  { %v77_v17 = vpop.f32.mrf.mxu0 }
  0xc9   :  { %v78_v18 = vadd.f32 %v212_v16, %v77_v17 }
  0xca   :  { %v238_v19 = vpop.f32.mrf.mxu0 }
  0xcb   :  { %v83_v20 = vmax.f32 %v78_v18, 0.0 }
  0xcc   :  { %v80_v21 = vpop.f32.mrf.mxu0 }
  0xcd   :  { %v84_v22 = vpack.c.bf16 %v83_v20, %v83_v20 }
  0xce   :  { %v239_v23 = vpop.f32.mrf.mxu0 }
  0xcf   :  { %257 = vmatmul.mubr.bf16.vlgmr.msra.gmra.mxu1 %v84_v22 }
 0x18f   :  { %v190_v25 = vpop.f32.mrf.mxu1 }
 0x190   :  { %v191_v26 = vadd.f32 %v214_v24, %v190_v25 }
 0x191   :  { %v258_v27 = vpop.f32.mrf.mxu1 }
 0x192   :  { %197 = vst.msk [vmem:[#allocation2] sm:$0xff] %vm196_vm4, %v191_v26 }
 0x193   :  { %v193_v28 = vpop.f32.mrf.mxu1 }
 0x194   :  { %283 = shalt.err (!%p280_p4)
}
 0x195   :  { %207 = dma.vmem_to_hbm [thread:$0]  %s205_s16, 128, %s372_s5, [#allocation3]   ;;  %v259_v29 = vpop.f32.mrf.mxu1 }
 0x196   :  { %292 = dma.done.wait [#allocation3], 128  }
 0x197   :  { %293 = vsyncadd [#allocation3], 4294967168 }
 0x198   :  { %211 = vsyncpa [#allocation3], 1 }

</bundles_post_ra>
